<compile_context>
chip_gen: v7x
topology: tpu7x:2x2x1
jax: 0.10.0
libtpu: 0.0.40
codegen_flags: <defaults>
</compile_context>

<pallas_src>
import jax
import jax.numpy as jnp
from jax.experimental import pallas as pl
from jax.experimental.pallas import tpu as pltpu

INPUT_SIZE = 3
HIDDEN = 128
HALF = HIDDEN // 2   # 64
OUT_SIZE = 3
EPS = 1e-5

PAD_IN = 8           # lane-rounded input feature width  (3 -> 8)
PAD_OUT = 8          # lane-rounded output feature width (3 -> 8)
TB_MAX = 2048        # max batch tile; amortizes per-grid-step overhead


def _mlp_kernel(x_ref, w1_ref, w2_ref, w3_ref, w4_ref, bias_ref, o_ref):
    x = x_ref[...]                            # (tb, 8)

    b1 = bias_ref[0:1, :]                     # (1, 128)
    b2 = bias_ref[1:2, :]                     # (1, 128)
    b3 = bias_ref[2:3, :HALF]                 # (1, 64)
    b4 = bias_ref[3:4, :PAD_OUT]              # (1, 8)
    relu_mask = bias_ref[4:5, :PAD_OUT]       # (1, 8): 1.0 where output col gets ReLU

    # Layer 1: Linear(3 -> 128) with BN folded in, + ReLU. (Dropout = identity in eval.)
    h = jnp.dot(x, w1_ref[...], preferred_element_type=jnp.float32) + b1
    h = jnp.maximum(h, 0.0)

    # Layer 2: Linear(128 -> 128) with BN folded in, + ReLU.
    h = jnp.dot(h, w2_ref[...], preferred_element_type=jnp.float32) + b2
    h = jnp.maximum(h, 0.0)

    # Layer 3: Linear(128 -> 64) + ReLU.
    h = jnp.dot(h, w3_ref[...], preferred_element_type=jnp.float32) + b3
    h = jnp.maximum(h, 0.0)

    # Layer 4: Linear(64 -> 3), carried at 8 output lanes (pad lanes stay 0).
    o = jnp.dot(h, w4_ref[...], preferred_element_type=jnp.float32) + b4

    # Business constraints: ReLU on columns 0 (modal) and 2 (rugi); column 1 passthrough.
    # mask * relu(o) + (1 - mask) * o, expressed as a single blend.
    o_ref[...] = o + relu_mask * (jnp.maximum(o, 0.0) - o)


def _pad2(a, rows, cols):
    a = jnp.asarray(a, jnp.float32)
    return jnp.pad(a, ((0, rows - a.shape[0]), (0, cols - a.shape[1])))


def prepare_params(params):
    """Fold BatchNorm into weights/biases and pad to TPU-friendly (trimmed) tiles.

    Call ONCE per parameter set; pass the result to bisnis_assistant_forward.
    Returns (w1p (8,128), w2p (128,128), w3p (128,64), w4p (64,8), bias_slab (8,128)).
    """
    w1, b1, g1, be1, rm1, rv1, w2, b2, g2, be2, rm2, rv2, w3, b3, w4, b4 = params

    # BatchNorm (eval mode) -> per-feature scale/shift, folded into the linear layer.
    s1 = g1 / jnp.sqrt(rv1 + EPS)
    t1 = be1 - rm1 * s1
    s2 = g2 / jnp.sqrt(rv2 + EPS)
    t2 = be2 - rm2 * s2

    w1f = w1 * s1[None, :]
    b1f = b1 * s1 + t1
    w2f = w2 * s2[None, :]
    b2f = b2 * s2 + t2

    w1p = _pad2(w1f, PAD_IN, HIDDEN)        # (3, 128)  -> (8, 128), pad rows are 0
    w2p = jnp.asarray(w2f, jnp.float32)     # (128, 128)
    w3p = jnp.asarray(w3, jnp.float32)      # (128, 64) — no padding
    w4p = _pad2(w4, HALF, PAD_OUT)          # (64, 3)   -> (64, 8), pad cols are 0

    # Pack the four bias rows + output ReLU mask into one (8, 128) slab (one DMA).
    bias_slab = jnp.zeros((8, HIDDEN), jnp.float32)
    bias_slab = bias_slab.at[0, :].set(b1f)
    bias_slab = bias_slab.at[1, :].set(b2f)
    bias_slab = bias_slab.at[2, :HALF].set(b3)
    bias_slab = bias_slab.at[3, :OUT_SIZE].set(b4)
    bias_slab = bias_slab.at[4, 0].set(1.0)   # modal -> relu
    bias_slab = bias_slab.at[4, 2].set(1.0)   # rugi  -> relu
    return (w1p, w2p, w3p, w4p, bias_slab)


def _cdiv(a, b):
    return -(-a // b)


def _round_up(n, m):
    return ((n + m - 1) // m) * m


def _tile_plan(B):
    """Pick (tb, b_pad) to minimize batch padding and keep v7x's two cores busy."""
    n_tiles = max(1, _cdiv(B, TB_MAX))
    if B > 512:
        n_tiles = max(n_tiles, 2)           # v7x: grid >= 2 so both TensorCores get work
    tb = max(8, _round_up(_cdiv(B, n_tiles), 8))
    b_pad = n_tiles * tb
    return tb, b_pad


def bisnis_assistant_forward(x, prepared):
    """x: (B, 3) float32, prepared = prepare_params(params) -> (B, 3) float32."""
    w1p, w2p, w3p, w4p, bias_slab = prepared
    B = x.shape[0]

    tb, b_pad = _tile_plan(B)
    grid = (b_pad // tb,)

    # Pad only to 8 input lanes (and up to the batch-tile multiple).
    x_p = jnp.pad(jnp.asarray(x, jnp.float32),
                  ((0, b_pad - B), (0, PAD_IN - INPUT_SIZE)))

    out = pl.pallas_call(
        _mlp_kernel,
        out_shape=jax.ShapeDtypeStruct((b_pad, PAD_OUT), jnp.float32),
        grid=grid,
        in_specs=[
            pl.BlockSpec((tb, PAD_IN), lambda i: (i, 0)),      # x: tiled over batch
            pl.BlockSpec((PAD_IN, HIDDEN), lambda i: (0, 0)),  # w1 (resident)
            pl.BlockSpec((HIDDEN, HIDDEN), lambda i: (0, 0)),  # w2 (resident)
            pl.BlockSpec((HIDDEN, HALF), lambda i: (0, 0)),    # w3 (resident)
            pl.BlockSpec((HALF, PAD_OUT), lambda i: (0, 0)),   # w4 (resident)
            pl.BlockSpec((8, HIDDEN), lambda i: (0, 0)),       # packed biases + mask
        ],
        out_specs=pl.BlockSpec((tb, PAD_OUT), lambda i: (i, 0)),
        compiler_params=pltpu.CompilerParams(
            dimension_semantics=("parallel",)),
    )(x_p, w1p, w2p, w3p, w4p, bias_slab)

    return out[:B, :OUT_SIZE]


def make_params(key):
    """Deterministic synthetic parameters matching BusinessConstrainedMLP(3, 128, 3)."""
    ks = jax.random.split(key, 12)

    def lin(kw, kb, fan_in, fan_out):
        bound = 1.0 / jnp.sqrt(fan_in)
        w = jax.random.uniform(kw, (fan_in, fan_out), jnp.float32, -bound, bound)
        b = jax.random.uniform(kb, (fan_out,), jnp.float32, -bound, bound)
        return w, b

    w1, b1 = lin(ks[0], ks[1], INPUT_SIZE, HIDDEN)
    g1 = 1.0 + 0.1 * jax.random.normal(ks[2], (HIDDEN,), jnp.float32)
    be1 = 0.1 * jax.random.normal(ks[3], (HIDDEN,), jnp.float32)
    rm1 = 0.05 * jax.random.normal(ks[4], (HIDDEN,), jnp.float32)
    rv1 = 1.0 + 0.1 * jax.random.uniform(ks[5], (HIDDEN,), jnp.float32)

    w2, b2 = lin(ks[6], ks[7], HIDDEN, HIDDEN)
    g2 = 1.0 + 0.1 * jax.random.normal(ks[8], (HIDDEN,), jnp.float32)
    be2 = 0.1 * jax.random.normal(ks[9], (HIDDEN,), jnp.float32)
    rm2 = 0.05 * jax.random.normal(ks[10], (HIDDEN,), jnp.float32)
    rv2 = 1.0 + 0.1 * jax.random.uniform(ks[11], (HIDDEN,), jnp.float32)

    k2 = jax.random.split(jax.random.fold_in(key, 7), 4)
    w3, b3 = lin(k2[0], k2[1], HIDDEN, HALF)
    w4, b4 = lin(k2[2], k2[3], HALF, OUT_SIZE)

    return (w1, b1, g1, be1, rm1, rv1,
            w2, b2, g2, be2, rm2, rv2,
            w3, b3, w4, b4)


def reference_forward(x, params):
    w1, b1, g1, be1, rm1, rv1, w2, b2, g2, be2, rm2, rv2, w3, b3, w4, b4 = params
    h = x @ w1 + b1
    h = (h - rm1) / jnp.sqrt(rv1 + EPS) * g1 + be1
    h = jnp.maximum(h, 0.0)
    h = h @ w2 + b2
    h = (h - rm2) / jnp.sqrt(rv2 + EPS) * g2 + be2
    h = jnp.maximum(h, 0.0)
    h = jnp.maximum(h @ w3 + b3, 0.0)
    o = h @ w4 + b4
    modal = jnp.maximum(o[:, 0], 0.0)
    profit = o[:, 1]
    rugi = jnp.maximum(o[:, 2], 0.0)
    return jnp.stack([modal, profit, rugi], axis=1)


if __name__ == "__main__":
    key = jax.random.PRNGKey(0)
    kx, kp = jax.random.split(key)
    params = make_params(kp)

    # Prepare (fold BN + trim/pad) once; re-used for every forward call.
    prepared = prepare_params(params)
    fwd = jax.jit(bisnis_assistant_forward)

    # Small batch (single 8-row tile).
    x_small = jax.random.normal(kx, (4, INPUT_SIZE), jnp.float32)
    out_small = jax.block_until_ready(fwd(x_small, prepared))
    ref_small = reference_forward(x_small, params)
    assert out_small.shape == (4, OUT_SIZE)
    assert jnp.allclose(out_small, ref_small, atol=1e-4, rtol=1e-4), (out_small, ref_small)

    # Batch > 8, non-multiple of 8 (exercises batch padding).
    x_mid = jax.random.normal(jax.random.fold_in(kx, 1), (37, INPUT_SIZE), jnp.float32)
    out_mid = jax.block_until_ready(fwd(x_mid, prepared))
    ref_mid = reference_forward(x_mid, params)
    assert out_mid.shape == (37, OUT_SIZE)
    assert jnp.allclose(out_mid, ref_mid, atol=1e-4, rtol=1e-4), (out_mid, ref_mid)

    # Batch > 512 (exercises the multi-tile / two-TensorCore grid path).
    x_big = jax.random.normal(jax.random.fold_in(kx, 2), (600, INPUT_SIZE), jnp.float32)
    out_big = jax.block_until_ready(fwd(x_big, prepared))
    ref_big = reference_forward(x_big, params)
    assert out_big.shape == (600, OUT_SIZE)
    assert jnp.allclose(out_big, ref_big, atol=1e-4, rtol=1e-4), (out_big, ref_big)

    print("KERNEL_OK")
</pallas_src>

<mosaic_0001>
module attributes {stable_mosaic.version = 11 : i64} {
  func.func @_mlp_kernel(%arg0: i32, %arg1: memref<8x8xf32, #tpu.memory_space<vmem>>, %arg2: memref<8x128xf32, #tpu.memory_space<vmem>>, %arg3: memref<128x128xf32, #tpu.memory_space<vmem>>, %arg4: memref<128x64xf32, #tpu.memory_space<vmem>>, %arg5: memref<64x8xf32, #tpu.memory_space<vmem>>, %arg6: memref<8x128xf32, #tpu.memory_space<vmem>>, %arg7: memref<8x8xf32, #tpu.memory_space<vmem>>) attributes {dimension_semantics = [#tpu.dimension_semantics<parallel>], iteration_bounds = array<i64: 1>, scalar_prefetch = 0 : i64, scratch_operands = 0 : i64, tpu.core_type = #tpu.core_type<tc>, window_params = [{transform_indices = @transform_0, window_bounds = array<i64: 8, 8>}, {pipeline_mode = #tpu.pipeline_mode<synchronous>, transform_indices = @transform_1, window_bounds = array<i64: 8, 128>}, {pipeline_mode = #tpu.pipeline_mode<synchronous>, transform_indices = @transform_2, window_bounds = array<i64: 128, 128>}, {pipeline_mode = #tpu.pipeline_mode<synchronous>, transform_indices = @transform_3, window_bounds = array<i64: 128, 64>}, {pipeline_mode = #tpu.pipeline_mode<synchronous>, transform_indices = @transform_4, window_bounds = array<i64: 64, 8>}, {pipeline_mode = #tpu.pipeline_mode<synchronous>, transform_indices = @transform_5, window_bounds = array<i64: 8, 128>}, {transform_indices = @transform_6, window_bounds = array<i64: 8, 8>}]} {
    %c0 = arith.constant 0 : index
    %c0_0 = arith.constant 0 : index
    %0 = vector.load %arg1[%c0, %c0_0] : memref<8x8xf32, #tpu.memory_space<vmem>>, vector<8x8xf32>
    %c0_1 = arith.constant 0 : index
    %c0_2 = arith.constant 0 : index
    %1 = vector.load %arg6[%c0_1, %c0_2] : memref<8x128xf32, #tpu.memory_space<vmem>>, vector<1x128xf32>
    %c1 = arith.constant 1 : index
    %c0_3 = arith.constant 0 : index
    %2 = vector.load %arg6[%c1, %c0_3] : memref<8x128xf32, #tpu.memory_space<vmem>>, vector<1x128xf32>
    %c2 = arith.constant 2 : index
    %c0_4 = arith.constant 0 : index
    %3 = vector.load %arg6[%c2, %c0_4] : memref<8x128xf32, #tpu.memory_space<vmem>>, vector<1x64xf32>
    %c3 = arith.constant 3 : index
    %c0_5 = arith.constant 0 : index
    %4 = vector.load %arg6[%c3, %c0_5] : memref<8x128xf32, #tpu.memory_space<vmem>>, vector<1x8xf32>
    %c4 = arith.constant 4 : index
    %c0_6 = arith.constant 0 : index
    %5 = vector.load %arg6[%c4, %c0_6] : memref<8x128xf32, #tpu.memory_space<vmem>>, vector<1x8xf32>
    %c0_7 = arith.constant 0 : index
    %c0_8 = arith.constant 0 : index
    %6 = vector.load %arg2[%c0_7, %c0_8] : memref<8x128xf32, #tpu.memory_space<vmem>>, vector<8x128xf32>
    %cst = arith.constant dense<0.000000e+00> : vector<8x128xf32>
    %7 = tpu.matmul %0, %6, %cst {dimension_numbers = #tpu.dot_dimension_numbers<[1], [0], [0], [1], [0, 0, 1, 1], [], []>} : vector<8x8xf32>, vector<8x128xf32>, vector<8x128xf32> -> vector<8x128xf32>
    %8 = vector.broadcast %1 : vector<1x128xf32> to vector<8x128xf32>
    %9 = arith.addf %7, %8 : vector<8x128xf32>
    %cst_9 = arith.constant 0.000000e+00 : f32
    %10 = vector.broadcast %cst_9 : f32 to vector<8x128xf32>
    %11 = arith.maximumf %9, %10 : vector<8x128xf32>
    %c0_10 = arith.constant 0 : index
    %c0_11 = arith.constant 0 : index
    %12 = vector.load %arg3[%c0_10, %c0_11] : memref<128x128xf32, #tpu.memory_space<vmem>>, vector<128x128xf32>
    %cst_12 = arith.constant dense<0.000000e+00> : vector<8x128xf32>
    %13 = tpu.matmul %11, %12, %cst_12 {dimension_numbers = #tpu.dot_dimension_numbers<[1], [0], [0], [1], [0, 0, 1, 1], [], []>} : vector<8x128xf32>, vector<128x128xf32>, vector<8x128xf32> -> vector<8x128xf32>
    %14 = vector.broadcast %2 : vector<1x128xf32> to vector<8x128xf32>
    %15 = arith.addf %13, %14 : vector<8x128xf32>
    %cst_13 = arith.constant 0.000000e+00 : f32
    %16 = vector.broadcast %cst_13 : f32 to vector<8x128xf32>
    %17 = arith.maximumf %15, %16 : vector<8x128xf32>
    %c0_14 = arith.constant 0 : index
    %c0_15 = arith.constant 0 : index
    %18 = vector.load %arg4[%c0_14, %c0_15] : memref<128x64xf32, #tpu.memory_space<vmem>>, vector<128x64xf32>
    %cst_16 = arith.constant dense<0.000000e+00> : vector<8x64xf32>
    %19 = tpu.matmul %17, %18, %cst_16 {dimension_numbers = #tpu.dot_dimension_numbers<[1], [0], [0], [1], [0, 0, 1, 1], [], []>} : vector<8x128xf32>, vector<128x64xf32>, vector<8x64xf32> -> vector<8x64xf32>
    %20 = vector.broadcast %3 : vector<1x64xf32> to vector<8x64xf32>
    %21 = arith.addf %19, %20 : vector<8x64xf32>
    %cst_17 = arith.constant 0.000000e+00 : f32
    %22 = vector.broadcast %cst_17 : f32 to vector<8x64xf32>
    %23 = arith.maximumf %21, %22 : vector<8x64xf32>
    %c0_18 = arith.constant 0 : index
    %c0_19 = arith.constant 0 : index
    %24 = vector.load %arg5[%c0_18, %c0_19] : memref<64x8xf32, #tpu.memory_space<vmem>>, vector<64x8xf32>
    %cst_20 = arith.constant dense<0.000000e+00> : vector<8x8xf32>
    %25 = tpu.matmul %23, %24, %cst_20 {dimension_numbers = #tpu.dot_dimension_numbers<[1], [0], [0], [1], [0, 0, 1, 1], [], []>} : vector<8x64xf32>, vector<64x8xf32>, vector<8x8xf32> -> vector<8x8xf32>
    %26 = vector.broadcast %4 : vector<1x8xf32> to vector<8x8xf32>
    %27 = arith.addf %25, %26 : vector<8x8xf32>
    %cst_21 = arith.constant 0.000000e+00 : f32
    %28 = vector.broadcast %cst_21 : f32 to vector<8x8xf32>
    %29 = arith.maximumf %27, %28 : vector<8x8xf32>
    %30 = arith.subf %29, %27 : vector<8x8xf32>
    %31 = vector.broadcast %5 : vector<1x8xf32> to vector<8x8xf32>
    %32 = arith.mulf %31, %30 : vector<8x8xf32>
    %33 = arith.addf %27, %32 : vector<8x8xf32>
    %c0_22 = arith.constant 0 : index
    %c0_23 = arith.constant 0 : index
    %34 = vector.load %arg7[%c0_22, %c0_23] : memref<8x8xf32, #tpu.memory_space<vmem>>, vector<8x8xf32>
    tpu.vector_store %arg7[%c0_22, %c0_23], %33 {strides = array<i32>} : memref<8x8xf32, #tpu.memory_space<vmem>>, vector<8x8xf32>,
    return
  }
  func.func @transform_0(%arg0: i32) -> (i32, i32) {
    %c0_i32 = arith.constant 0 : i32
    %c0_i32_0 = arith.constant 0 : i32
    return %arg0, %c0_i32 : i32, i32
  }
  func.func @transform_1(%arg0: i32) -> (i32, i32) {
    %c0_i32 = arith.constant 0 : i32
    %c0_i32_0 = arith.constant 0 : i32
    %c0_i32_1 = arith.constant 0 : i32
    return %c0_i32, %c0_i32_0 : i32, i32
  }
  func.func @transform_2(%arg0: i32) -> (i32, i32) {
    %c0_i32 = arith.constant 0 : i32
    %c0_i32_0 = arith.constant 0 : i32
    %c0_i32_1 = arith.constant 0 : i32
    return %c0_i32, %c0_i32_0 : i32, i32
  }
  func.func @transform_3(%arg0: i32) -> (i32, i32) {
    %c0_i32 = arith.constant 0 : i32
    %c0_i32_0 = arith.constant 0 : i32
    %c0_i32_1 = arith.constant 0 : i32
    return %c0_i32, %c0_i32_0 : i32, i32
  }
  func.func @transform_4(%arg0: i32) -> (i32, i32) {
    %c0_i32 = arith.constant 0 : i32
    %c0_i32_0 = arith.constant 0 : i32
    %c0_i32_1 = arith.constant 0 : i32
    return %c0_i32, %c0_i32_0 : i32, i32
  }
  func.func @transform_5(%arg0: i32) -> (i32, i32) {
    %c0_i32 = arith.constant 0 : i32
    %c0_i32_0 = arith.constant 0 : i32
    %c0_i32_1 = arith.constant 0 : i32
    return %c0_i32, %c0_i32_0 : i32, i32
  }
  func.func @transform_6(%arg0: i32) -> (i32, i32) {
    %c0_i32 = arith.constant 0 : i32
    %c0_i32_0 = arith.constant 0 : i32
    return %arg0, %c0_i32 : i32, i32
  }
}

</mosaic_0001>

<bundles_post_ra>
// kernel: bisnis_assistant_forward.1
= control target key start
LH: loop header
LB: loop body
LE: loop exit
PB: predicated region body
PF: predicated region fallthrough
CT: control target
= control target key end

     0   :  { %vm34_vm0 = vcmask 64512   ;;  %v599_v0 = vmov 0.0   ;;  %vm600_vm1 = vmmov 0   ;;  %v601_v4 = vmov 0.0|0.0   ;;  %s812_s1 = inlined_call_operand.vmem [shape: f32[8,128], index: 1, kind: input, shape index: {}]   ;;  %s813_s0 = inlined_call_operand.vmem [shape: f32[8,8], index: 0, kind: input, shape index: {}]   ;;  %s814_s2 = inlined_call_operand.vmem [shape: f32[128,128], index: 2, kind: input, shape index: {}]   ;;  %s815_s3 = inlined_call_operand.vmem [shape: f32[128,64], index: 3, kind: input, shape index: {}]   ;;  %s816_s5 = inlined_call_operand.vmem [shape: f32[8,128], index: 5, kind: input, shape index: {}]   ;;  %s817_s4 = inlined_call_operand.vmem [shape: f32[64,8], index: 4, kind: input, shape index: {}]   ;;  %s818_s6 = inlined_call_operand.vmem [shape: f32[8,8], index: 6, kind: output, shape index: {}]  }
   0x1   :  { %442 = vmatprep.subr.mxu0 %v599_v0  ;;  %v29_v1 = vld [vmem:[%s812_s1] sm:$0xff]  ;;  %444 = vmatprep.mubr.msk.f32.mxu0 %vm600_vm1, %v599_v0  ;;  %v110_v5 = vld [vmem:[%s814_s2 + $0x8] sm:$0xff]  ;;  %v111_v6 = vld [vmem:[%s814_s2 + $0x10] sm:$0xff]  ;;  %vm303_vm2 = vcmask 523264  }
   0x2   :  { %v23_v2 = vld [vmem:[%s813_s0] sm:$0xff]  ;;  %443 = vmatpush3.msra.mxu0 %v29_v1  ;;  %536 = vmatprep.subr.bf16.mxu1 %v601_v4  ;;  %v112_v7 = vld [vmem:[%s814_s2 + $0x18] sm:$0xff]  ;;  %v114_v11 = vld [vmem:[%s814_s2 + $0x28] sm:$0xff] }
   0x3   :  { %v109_v3 = vld [vmem:[%s814_s2] sm:$0xff]  ;;  %445 = vmatmul.mubr.msk.f32.vlgmr.msra.gmra.mrb[0].mxu0 %vm34_vm0, %v23_v2  ;;  %479 = vmatprep.mubr.msk.f32.mxu1 %vm600_vm1, %v599_v0  ;;  %v540_v9 = vpack.c.bf16 %v112_v7, %v111_v6  ;;  %v115_v13 = vld [vmem:[%s814_s2 + $0x30] sm:$0xff]  ;;  %v116_v14 = vld [vmem:[%s814_s2 + $0x38] sm:$0xff] }
   0x4   :  { %v537_v8 = vpack.c.bf16 %v110_v5, %v109_v3  ;;  %560 = vmatprep.subr.bf16.mxu0 %v601_v4  ;;  %514 = vmatprep.mubr.msk.f32.mxu0 %vm600_vm1, %v599_v0  ;;  %v113_v10 = vld [vmem:[%s814_s2 + $0x20] sm:$0xff]  ;;  %v546_v15 = vpack.c.bf16 %v116_v14, %v115_v13  ;;  %v118_v17 = vld [vmem:[%s814_s2 + $0x48] sm:$0xff]  ;;  %v119_v19 = vld [vmem:[%s814_s2 + $0x50] sm:$0xff] }
   0x5   :  { %v543_v12 = vpack.c.bf16 %v114_v11, %v113_v10  ;;  %v117_v16 = vld [vmem:[%s814_s2 + $0x40] sm:$0xff]  ;;  %v120_v20 = vld [vmem:[%s814_s2 + $0x58] sm:$0xff]  ;;  %v122_v23 = vld [vmem:[%s814_s2 + $0x68] sm:$0xff] }
   0x6   :  { %538 = vmatpush3.bf16.msra.mxu1 %v537_v8  ;;  %v549_v18 = vpack.c.bf16 %v118_v17, %v117_v16  ;;  %v552_v21 = vpack.c.bf16 %v120_v20, %v119_v19  ;;  %v121_v22 = vld [vmem:[%s814_s2 + $0x60] sm:$0xff]  ;;  %v123_v25 = vld [vmem:[%s814_s2 + $0x70] sm:$0xff]  ;;  %v124_v26 = vld [vmem:[%s814_s2 + $0x78] sm:$0xff] }
   0x7   :  { %539 = vmatprep.subr.bf16.mxu1 %v601_v4  ;;  %v555_v24 = vpack.c.bf16 %v122_v23, %v121_v22  ;;  %v558_v27 = vpack.c.bf16 %v124_v26, %v123_v25  ;;  %v200_v28 = vld [vmem:[%s815_s3] sm:$0xff]  ;;  %v201_v29 = vld [vmem:[%s815_s3 + $0x8] sm:$0xff]  ;;  %v202_v30 = vld [vmem:[%s815_s3 + $0x10] sm:$0xff] }
   0x8   :  { %v561_v31 = vpack.c.bf16 %v201_v29, %v200_v28  ;;  %v203_v32 = vld [vmem:[%s815_s3 + $0x18] sm:$0xff]  ;;  %v204_v34 = vld [vmem:[%s815_s3 + $0x20] sm:$0xff]  ;;  %v205_v35 = vld [vmem:[%s815_s3 + $0x28] sm:$0xff] }
   0x9   :  { %v564_v33 = vpack.c.bf16 %v203_v32, %v202_v30  ;;  %v567_v36 = vpack.c.bf16 %v205_v35, %v204_v34  ;;  %v206_v37 = vld [vmem:[%s815_s3 + $0x30] sm:$0xff]  ;;  %v207_v38 = vld [vmem:[%s815_s3 + $0x38] sm:$0xff]  ;;  %v208_v40 = vld [vmem:[%s815_s3 + $0x40] sm:$0xff] }
   0xa   :  { %541 = vmatpush3.bf16.msra.mxu1 %v540_v9  ;;  %562 = vmatpush3.bf16.msra.mxu0 %v561_v31  ;;  %v570_v39 = vpack.c.bf16 %v207_v38, %v206_v37  ;;  %v209_v41 = vld [vmem:[%s815_s3 + $0x48] sm:$0xff]  ;;  %v210_v43 = vld [vmem:[%s815_s3 + $0x50] sm:$0xff]  ;;  %v211_v44 = vld [vmem:[%s815_s3 + $0x58] sm:$0xff] }
   0xb   :  { %542 = vmatprep.subr.bf16.mxu1 %v601_v4  ;;  %563 = vmatprep.subr.bf16.mxu0 %v601_v4  ;;  %v573_v42 = vpack.c.bf16 %v209_v41, %v208_v40  ;;  %v576_v45 = vpack.c.bf16 %v211_v44, %v210_v43  ;;  %v212_v46 = vld [vmem:[%s815_s3 + $0x60] sm:$0xff]  ;;  %v213_v47 = vld [vmem:[%s815_s3 + $0x68] sm:$0xff]  ;;  %v214_v54 = vld [vmem:[%s815_s3 + $0x70] sm:$0xff] }
   0xc   :  { %v579_v48 = vpack.c.bf16 %v213_v47, %v212_v46  ;;  %v390_v49 = vld [vmem:[%s816_s5] ss:$0 sm:$0xff]  ;;  %v215_v55 = vld [vmem:[%s815_s3 + $0x78] sm:$0xff]  ;;  %v292_v58 = vld [vmem:[%s817_s4 + $0x8] sm:$0xff] }
   0xd   :  { %v582_v56 = vpack.c.bf16 %v215_v55, %v214_v54  ;;  %v291_v57 = vld [vmem:[%s817_s4] sm:$0xff]  ;;  %v293_v59 = vld [vmem:[%s817_s4 + $0x10] sm:$0xff]  ;;  %v294_v61 = vld [vmem:[%s817_s4 + $0x18] sm:$0xff] }
   0xe   :  { %544 = vmatpush3.bf16.msra.mxu1 %v543_v12  ;;  %565 = vmatpush3.bf16.msra.mxu0 %v564_v33  ;;  %v585_v60 = vpack.c.bf16 %v292_v58, %v291_v57  ;;  %v588_v62 = vpack.c.bf16 %v294_v61, %v293_v59  ;;  %v295_v63 = vld [vmem:[%s817_s4 + $0x20] sm:$0xff]  ;;  %v297_v8 = vld [vmem:[%s817_s4 + $0x30] sm:$0xff]  ;;  %v298_v9 = vld [vmem:[%s817_s4 + $0x38] sm:$0xff] }
   0xf   :  { %545 = vmatprep.subr.bf16.mxu1 %v601_v4  ;;  %566 = vmatprep.subr.bf16.mxu0 %v601_v4  ;;  %v392_v2 = vld [vmem:[%s816_s5 + $0x1] ss:$0 sm:$0xff]  ;;  %v594_v10 = vpack.c.bf16 %v298_v9, %v297_v8  ;;  %v396_v20 = vld [vmem:[%s816_s5 + $0x4] ss:$0 sm:$0xff] }
  0x12   :  { %547 = vmatpush3.bf16.msra.mxu1 %v546_v15  ;;  %568 = vmatpush3.bf16.msra.mxu0 %v567_v36  ;;  %v394_v15 = vld [vmem:[%s816_s5 + $0x3] ss:$0 sm:$0xff] }
  0x13   :  { %548 = vmatprep.subr.bf16.mxu1 %v601_v4  ;;  %569 = vmatprep.subr.bf16.mxu0 %v601_v4 }
  0x16   :  { %550 = vmatpush3.bf16.msra.mxu1 %v549_v18  ;;  %571 = vmatpush3.bf16.msra.mxu0 %v570_v39 }
  0x17   :  { %551 = vmatprep.subr.bf16.mxu1 %v601_v4  ;;  %572 = vmatprep.subr.bf16.mxu0 %v601_v4 }
  0x1a   :  { %553 = vmatpush3.bf16.msra.mxu1 %v552_v21  ;;  %574 = vmatpush3.bf16.msra.mxu0 %v573_v42 }
  0x1b   :  { %554 = vmatprep.subr.bf16.mxu1 %v601_v4  ;;  %575 = vmatprep.subr.bf16.mxu0 %v601_v4 }
  0x1e   :  { %556 = vmatpush3.bf16.msra.mxu1 %v555_v24  ;;  %577 = vmatpush3.bf16.msra.mxu0 %v576_v45 }
  0x1f   :  { %557 = vmatprep.subr.bf16.mxu1 %v601_v4  ;;  %578 = vmatprep.subr.bf16.mxu0 %v601_v4 }
  0x22   :  { %559 = vmatpush3.bf16.msra.mxu1 %v558_v27  ;;  %580 = vmatpush3.bf16.msra.mxu0 %v579_v48 }
  0x23   :  { %584 = vmatprep.subr.bf16.mxu1 %v601_v4  ;;  %581 = vmatprep.subr.bf16.mxu0 %v601_v4 }
  0x26   :  { %583 = vmatpush3.bf16.msra.mxu0 %v582_v56 }
  0xd6   :  { %v104_v50 = vpop.f32.mrb[0].mxu0 }
  0xd7   :  { %v105_v51 = vadd.f32 %v390_v49, %v104_v50  ;;  %v446_v52 = vpop.f32.mrb[1].mxu0 }
  0xd9   :  { %v108_v53 = vmax.f32 %v105_v51, 0.0 }
  0xdb   :  { %480 = vmatmul.mubr.f32.vlgmr.msra.gmra.mrb[0].mxu1 %v108_v53 }
  0xdc   :  { %533 = vmatprep.mubr.msk.f32.mxu1 %vm600_vm1, %v599_v0  ;;  %586 = vmatpush3.bf16.msra.mxu1 %v585_v60  ;;  %v296_v0 = vld [vmem:[%s817_s4 + $0x28] sm:$0xff] }
  0xdd   :  { %587 = vmatprep.subr.bf16.mxu1 %v601_v4  ;;  %v591_v1 = vpack.c.bf16 %v296_v0, %v295_v63 }
  0xe0   :  { %589 = vmatpush3.bf16.msra.mxu1 %v588_v62 }
  0xe1   :  { %590 = vmatprep.subr.bf16.mxu1 %v601_v4 }
  0xe4   :  { %592 = vmatpush3.bf16.msra.mxu1 %v591_v1 }
  0xe5   :  { %593 = vmatprep.subr.bf16.mxu1 %v601_v4  ;;  %v393_v4 = vld [vmem:[%s816_s5 + $0x2] ss:$0 sm:$0xff] }
  0xe8   :  { %595 = vmatpush3.bf16.msra.mxu1 %v594_v10 }
 0x1ae   :  { %v195_v3 = vpop.f32.mrb[0].mxu1 }
 0x1af   :  { %v196_v5 = vadd.f32 %v392_v2, %v195_v3  ;;  %v481_v6 = vpop.f32.mrb[1].mxu1 }
 0x1b1   :  { %v199_v7 = vmax.f32 %v196_v5, 0.0 }
 0x1b3   :  { %515 = vmatmul.mubr.f32.vlgmr.msra.gmra.mrb[2].mxu0 %v199_v7 }
 0x286   :  { %v286_v11 = vpop.f32.mrb[2].mxu0 }
 0x287   :  { %v287_v12 = vadd.f32 %v393_v4, %v286_v11  ;;  %v516_v13 = vpop.f32.mrb[3].mxu0 }
 0x289   :  { %v290_v14 = vmax.f32 %v287_v12, 0.0 }
 0x28b   :  { %534 = vmatmul.mubr.msk.f32.vlgmr.msra.gmra.mrb[2].mxu1 %vm303_vm2, %v290_v14 }
 0x35e   :  { %v373_v16 = vpop.f32.mrb[2].mxu1 }
 0x35f   :  { %v374_v17 = vadd.f32 %v394_v15, %v373_v16  ;;  %v535_v18 = vpop.f32.mrb[3].mxu1 }
 0x361   :  { %v377_v19 = vmax.f32 %v374_v17, 0.0 }
 0x363   :  { %v378_v21 = vsub.f32 %v377_v19, %v374_v17 }
 0x365   :  { %v383_v22 = vmul.f32 %v396_v20, %v378_v21 }
 0x367   :  { %v384_v23 = vadd.f32 %v383_v22, %v374_v17 }
 0x369   :  { %385 = vst.msk [vmem:[%s818_s6] sm:$0xff] %vm34_vm0, %v384_v23 }

</bundles_post_ra>
